<compile_context>
chip_gen: v6e
topology: v6e:2x2x1
jax: 0.10.0
libtpu: 0.0.40
codegen_flags: <defaults>
</compile_context>

<pallas_src>
import functools

import jax
import jax.numpy as jnp
from jax.experimental import pallas as pl
from jax.experimental.pallas import tpu as pltpu

NUM_LAYERS = 2  # matches the module-level `num_layers` in the reference code


def _round_up(x, m):
    return ((x + m - 1) // m) * m


def _slab_layout(s_dim, h_dim):
    """Layout of the packed [3*h_dim, h_dim] parameter slab (transposed weights)."""
    assert h_dim % 8 == 0, "h_dim must be a multiple of 8 for tile-aligned slab rows"
    assert h_dim >= s_dim + 5, "vector block needs at least s_dim + 5 columns"
    lay = dict(
        w0=0,                 # rows [0,   h): w0^T  (fc_n[0] weight, transposed)
        w1=h_dim,             # rows [h,  2h): w1^T  (fc_n[1] weight, transposed)
        vec=2 * h_dim,        # rows [2h, 3h): column-vector block (see below)
        rows=3 * h_dim,
        # column indices inside the vector block:
        c_w_in=0,             # cols [0, s_dim): W_in^T  (col j = W_in[j, :])
        c_b_in=s_dim,         # fc_in bias   (column vector)
        c_b0=s_dim + 1,       # fc_n[0] bias
        c_b1=s_dim + 2,       # fc_n[1] bias
        c_w_out=s_dim + 3,    # fc_out weight [h_dim] as a column
        c_b_out=s_dim + 4,    # fc_out bias scalar, stored at row 0
    )
    return lay


def pack_params(params, s_dim, h_dim):
    """Pack all weights/biases into one [3*h_dim, h_dim] f32 slab (do this once)."""
    lay = _slab_layout(s_dim, h_dim)
    vec = jnp.zeros((h_dim, h_dim), jnp.float32)
    vec = vec.at[:, lay["c_w_in"]:lay["c_w_in"] + s_dim].set(params["w_in"].T)
    vec = vec.at[:, lay["c_b_in"]].set(params["b_in"][0])
    vec = vec.at[:, lay["c_b0"]].set(params["b0"][0])
    vec = vec.at[:, lay["c_b1"]].set(params["b1"][0])
    vec = vec.at[:, lay["c_w_out"]].set(params["w_out"][:, 0])
    vec = vec.at[0, lay["c_b_out"]].set(params["b_out"][0, 0])
    slab = jnp.concatenate(
        [params["w0"].T.astype(jnp.float32),
         params["w1"].T.astype(jnp.float32),
         vec],
        axis=0)
    assert slab.shape == (lay["rows"], h_dim), slab.shape
    return slab


def vnet_kernel(x_ref, p_ref, o_ref, *, s_dim, h_dim, lay):
    xT = x_ref[...]                                          # [s_dim, tb] (lane-dense)
    vec = p_ref[lay["vec"]:lay["vec"] + h_dim, :]            # [h_dim, h_dim] column block

    # fc_in (K = s_dim = 2): outer-product FMA on the VPU, seeded with the bias column.
    h = vec[:, lay["c_b_in"]:lay["c_b_in"] + 1]              # [h_dim, 1]
    for j in range(s_dim):                                   # static unroll
        w_col = vec[:, lay["c_w_in"] + j:lay["c_w_in"] + j + 1]   # [h_dim, 1]
        h = h + w_col * xT[j:j + 1, :]                       # outer product -> [h_dim, tb]
    h = jnp.maximum(h, 0.0)                                  # [h_dim, tb]

    # Two h_dim x h_dim hidden layers on the MXU: N = tb -> full lane occupancy.
    w0t = p_ref[lay["w0"]:lay["w0"] + h_dim, :]              # [h_dim, h_dim] = w0^T
    h = jnp.dot(w0t, h, preferred_element_type=jnp.float32)
    h = jnp.maximum(h + vec[:, lay["c_b0"]:lay["c_b0"] + 1], 0.0)

    w1t = p_ref[lay["w1"]:lay["w1"] + h_dim, :]              # [h_dim, h_dim] = w1^T
    h = jnp.dot(w1t, h, preferred_element_type=jnp.float32)
    h = jnp.maximum(h + vec[:, lay["c_b1"]:lay["c_b1"] + 1], 0.0)

    # fc_out (N = 1): VPU multiply + sublane reduce -> lane-dense [1, tb] output row.
    w_out = vec[:, lay["c_w_out"]:lay["c_w_out"] + 1]        # [h_dim, 1]
    b_out = vec[0:1, lay["c_b_out"]:lay["c_b_out"] + 1]      # [1, 1]
    o_ref[...] = jnp.sum(h * w_out, axis=0, keepdims=True) + b_out


def v_net_forward(state, packed, s_dim, h_dim, *, block_b=4096):
    """state: [B, s_dim] f32; packed: pack_params(...) slab. Returns [B, 1] f32."""
    B = state.shape[0]
    lay = _slab_layout(s_dim, h_dim)
    assert packed.shape == (lay["rows"], h_dim), packed.shape

    # Lane-dense batch tile: multiple of 128 lanes, large to amortize the
    # ~0.35 us/grid-step overhead, capped at block_b.
    tb = min(block_b, _round_up(max(B, 1), 128))
    # For sizeable batches keep >= 2 grid tiles so v7x's two TensorCores both work.
    if B > 256 and _round_up(B, tb) // tb < 2:
        tb = _round_up(pl.cdiv(B, 2), 128)
    b_pad = _round_up(B, tb)
    num_tiles = b_pad // tb

    # Wrapper-side layout plumbing: pad the batch and put it on the lane axis.
    xT = jnp.pad(state, ((0, b_pad - B), (0, 0))).T          # [s_dim, b_pad]

    kernel = functools.partial(vnet_kernel, s_dim=s_dim, h_dim=h_dim, lay=lay)
    out = pl.pallas_call(
        kernel,
        out_shape=jax.ShapeDtypeStruct((num_tiles, tb), jnp.float32),
        grid_spec=pltpu.PrefetchScalarGridSpec(
            num_scalar_prefetch=0,
            grid=(num_tiles,),
            in_specs=[
                pl.BlockSpec((s_dim, tb), lambda i: (0, i)),            # streamed batch tile
                pl.BlockSpec((lay["rows"], h_dim), lambda i: (0, 0)),   # grid-invariant params
            ],
            out_specs=pl.BlockSpec((1, tb), lambda i: (i, 0)),          # lane-dense row
        ),
        compiler_params=pltpu.CompilerParams(
            dimension_semantics=("parallel",)),   # batch axis: 2-TC split on v7x
    )(xT, packed)
    return out.reshape(b_pad, 1)[:B]


def init_params(key, s_dim, h_dim):
    """Deterministic init mimicking nn.Linear's U(-1/sqrt(fan_in), 1/sqrt(fan_in))."""
    def linear(key, fan_in, fan_out):
        k_w, k_b = jax.random.split(key)
        bound = 1.0 / jnp.sqrt(jnp.float32(fan_in))
        w = jax.random.uniform(k_w, (fan_in, fan_out), jnp.float32, -bound, bound)
        b = jax.random.uniform(k_b, (1, fan_out), jnp.float32, -bound, bound)
        return w, b

    keys = jax.random.split(key, 2 + NUM_LAYERS)
    params = {}
    params["w_in"], params["b_in"] = linear(keys[0], s_dim, h_dim)
    params["w0"], params["b0"] = linear(keys[1], h_dim, h_dim)
    params["w1"], params["b1"] = linear(keys[2], h_dim, h_dim)
    params["w_out"], params["b_out"] = linear(keys[3], h_dim, 1)
    return params


def v_net_reference(state, params):
    """Pure-JAX reference of the PyTorch forward pass (for verification)."""
    h = jnp.maximum(state @ params["w_in"] + params["b_in"], 0.0)
    h = jnp.maximum(h @ params["w0"] + params["b0"], 0.0)
    h = jnp.maximum(h @ params["w1"] + params["b1"], 0.0)
    return h @ params["w_out"] + params["b_out"]


if __name__ == "__main__":
    # MountainCar: s_dim = 2 (position, velocity). Small hidden size.
    B, S_DIM, H_DIM = 8, 2, 32

    key = jax.random.PRNGKey(0)
    k_params, k_state, k_state2 = jax.random.split(key, 3)
    params = init_params(k_params, S_DIM, H_DIM)
    packed = pack_params(params, S_DIM, H_DIM)  # pack once, reuse across calls

    # Small batch (single grid step, padded up to 128 lanes).
    state = jax.random.normal(k_state, (B, S_DIM), dtype=jnp.float32)
    out = jax.block_until_ready(v_net_forward(state, packed, S_DIM, H_DIM))
    ref = v_net_reference(state, params)
    assert out.shape == (B, 1), out.shape
    assert jnp.allclose(out, ref, atol=1e-5, rtol=1e-5), (out, ref)

    # Larger ragged batch: exercises the multi-tile grid, padding and the
    # ">= 2 tiles" split path (B=300, block_b=512 -> tb=256, 2 grid steps).
    state2 = jax.random.normal(k_state2, (300, S_DIM), dtype=jnp.float32)
    out2 = jax.block_until_ready(
        v_net_forward(state2, packed, S_DIM, H_DIM, block_b=512))
    ref2 = v_net_reference(state2, params)
    assert out2.shape == (300, 1), out2.shape
    assert jnp.allclose(out2, ref2, atol=1e-5, rtol=1e-5), (out2, ref2)

    print("KERNEL_OK")
</pallas_src>

<mosaic_0001>
module attributes {stable_mosaic.version = 11 : i64} {
  func.func @vnet_kernel(%arg0: i32, %arg1: memref<2x128xf32, #tpu.memory_space<vmem>>, %arg2: memref<96x32xf32, #tpu.memory_space<vmem>>, %arg3: memref<1x128xf32, #tpu.memory_space<vmem>>) attributes {dimension_semantics = [#tpu.dimension_semantics<parallel>], iteration_bounds = array<i64: 1>, scalar_prefetch = 0 : i64, scratch_operands = 0 : i64, tpu.core_type = #tpu.core_type<tc>, window_params = [{transform_indices = @transform_0, window_bounds = array<i64: 2, 128>}, {pipeline_mode = #tpu.pipeline_mode<synchronous>, transform_indices = @transform_1, window_bounds = array<i64: 96, 32>}, {transform_indices = @transform_2, window_bounds = array<i64: 1, 128>}]} {
    %c0 = arith.constant 0 : index
    %c0_0 = arith.constant 0 : index
    %0 = vector.load %arg1[%c0, %c0_0] : memref<2x128xf32, #tpu.memory_space<vmem>>, vector<2x128xf32>
    %c64 = arith.constant 64 : index
    %c0_1 = arith.constant 0 : index
    %1 = vector.load %arg2[%c64, %c0_1] : memref<96x32xf32, #tpu.memory_space<vmem>>, vector<32x32xf32>
    %2 = vector.extract_strided_slice %1 {offsets = [0, 2], sizes = [32, 1], strides = [1, 1]} : vector<32x32xf32> to vector<32x1xf32>
    %3 = vector.extract_strided_slice %1 {offsets = [0, 0], sizes = [32, 1], strides = [1, 1]} : vector<32x32xf32> to vector<32x1xf32>
    %4 = vector.extract_strided_slice %0 {offsets = [0, 0], sizes = [1, 128], strides = [1, 1]} : vector<2x128xf32> to vector<1x128xf32>
    %5 = vector.broadcast %3 : vector<32x1xf32> to vector<32x128xf32>
    %6 = vector.broadcast %4 : vector<1x128xf32> to vector<32x128xf32>
    %7 = arith.mulf %5, %6 : vector<32x128xf32>
    %8 = vector.broadcast %2 : vector<32x1xf32> to vector<32x128xf32>
    %9 = arith.addf %8, %7 : vector<32x128xf32>
    %10 = vector.extract_strided_slice %1 {offsets = [0, 1], sizes = [32, 1], strides = [1, 1]} : vector<32x32xf32> to vector<32x1xf32>
    %11 = vector.extract_strided_slice %0 {offsets = [1, 0], sizes = [1, 128], strides = [1, 1]} : vector<2x128xf32> to vector<1x128xf32>
    %12 = vector.broadcast %10 : vector<32x1xf32> to vector<32x128xf32>
    %13 = vector.broadcast %11 : vector<1x128xf32> to vector<32x128xf32>
    %14 = arith.mulf %12, %13 : vector<32x128xf32>
    %15 = arith.addf %9, %14 : vector<32x128xf32>
    %cst = arith.constant 0.000000e+00 : f32
    %16 = vector.broadcast %cst : f32 to vector<32x128xf32>
    %17 = arith.maximumf %15, %16 : vector<32x128xf32>
    %c0_2 = arith.constant 0 : index
    %c0_3 = arith.constant 0 : index
    %18 = vector.load %arg2[%c0_2, %c0_3] : memref<96x32xf32, #tpu.memory_space<vmem>>, vector<32x32xf32>
    %cst_4 = arith.constant dense<0.000000e+00> : vector<32x128xf32>
    %19 = tpu.matmul %18, %17, %cst_4 {dimension_numbers = #tpu.dot_dimension_numbers<[1], [0], [0], [1], [0, 0, 1, 1], [], []>} : vector<32x32xf32>, vector<32x128xf32>, vector<32x128xf32> -> vector<32x128xf32>
    %20 = vector.extract_strided_slice %1 {offsets = [0, 3], sizes = [32, 1], strides = [1, 1]} : vector<32x32xf32> to vector<32x1xf32>
    %21 = vector.broadcast %20 : vector<32x1xf32> to vector<32x128xf32>
    %22 = arith.addf %19, %21 : vector<32x128xf32>
    %cst_5 = arith.constant 0.000000e+00 : f32
    %23 = vector.broadcast %cst_5 : f32 to vector<32x128xf32>
    %24 = arith.maximumf %22, %23 : vector<32x128xf32>
    %c32 = arith.constant 32 : index
    %c0_6 = arith.constant 0 : index
    %25 = vector.load %arg2[%c32, %c0_6] : memref<96x32xf32, #tpu.memory_space<vmem>>, vector<32x32xf32>
    %cst_7 = arith.constant dense<0.000000e+00> : vector<32x128xf32>
    %26 = tpu.matmul %25, %24, %cst_7 {dimension_numbers = #tpu.dot_dimension_numbers<[1], [0], [0], [1], [0, 0, 1, 1], [], []>} : vector<32x32xf32>, vector<32x128xf32>, vector<32x128xf32> -> vector<32x128xf32>
    %27 = vector.extract_strided_slice %1 {offsets = [0, 4], sizes = [32, 1], strides = [1, 1]} : vector<32x32xf32> to vector<32x1xf32>
    %28 = vector.broadcast %27 : vector<32x1xf32> to vector<32x128xf32>
    %29 = arith.addf %26, %28 : vector<32x128xf32>
    %cst_8 = arith.constant 0.000000e+00 : f32
    %30 = vector.broadcast %cst_8 : f32 to vector<32x128xf32>
    %31 = arith.maximumf %29, %30 : vector<32x128xf32>
    %32 = vector.extract_strided_slice %1 {offsets = [0, 5], sizes = [32, 1], strides = [1, 1]} : vector<32x32xf32> to vector<32x1xf32>
    %33 = vector.extract_strided_slice %1 {offsets = [0, 6], sizes = [1, 1], strides = [1, 1]} : vector<32x32xf32> to vector<1x1xf32>
    %34 = vector.broadcast %32 : vector<32x1xf32> to vector<32x128xf32>
    %35 = arith.mulf %31, %34 : vector<32x128xf32>
    %cst_9 = arith.constant dense<0.000000e+00> : vector<128xf32>
    %36 = vector.multi_reduction <add>, %35, %cst_9 [0] : vector<32x128xf32> to vector<128xf32>
    %37 = vector.shape_cast %36 : vector<128xf32> to vector<1x128xf32>
    %38 = vector.broadcast %33 : vector<1x1xf32> to vector<1x128xf32>
    %39 = arith.addf %37, %38 : vector<1x128xf32>
    %c0_10 = arith.constant 0 : index
    %c0_11 = arith.constant 0 : index
    %40 = vector.load %arg3[%c0_10, %c0_11] : memref<1x128xf32, #tpu.memory_space<vmem>>, vector<1x128xf32>
    tpu.vector_store %arg3[%c0_10, %c0_11], %39 {strides = array<i32>} : memref<1x128xf32, #tpu.memory_space<vmem>>, vector<1x128xf32>,
    return
  }
  func.func @transform_0(%arg0: i32) -> (i32, i32) {
    %c0_i32 = arith.constant 0 : i32
    %c0_i32_0 = arith.constant 0 : i32
    return %c0_i32, %arg0 : i32, i32
  }
  func.func @transform_1(%arg0: i32) -> (i32, i32) {
    %c0_i32 = arith.constant 0 : i32
    %c0_i32_0 = arith.constant 0 : i32
    %c0_i32_1 = arith.constant 0 : i32
    return %c0_i32, %c0_i32_0 : i32, i32
  }
  func.func @transform_2(%arg0: i32) -> (i32, i32) {
    %c0_i32 = arith.constant 0 : i32
    %c0_i32_0 = arith.constant 0 : i32
    return %arg0, %c0_i32 : i32, i32
  }
}

</mosaic_0001>

<bundles_post_ra>
// kernel: tpu_custom_call.1
= control target key start
LH: loop header
LB: loop body
LE: loop exit
PB: predicated region body
PF: predicated region fallthrough
CT: control target
= control target key end

     0   :  { %v485_v1 = vmov 2   ;;  %v486_v2 = vmov 0   ;;  %s591_s0 = inlined_call_operand.vmem [shape: f32[2,128], index: 0, kind: input, shape index: {}]   ;;  %s592_s1 = inlined_call_operand.vmem [shape: f32[96,32], index: 1, kind: input, shape index: {}]   ;;  %s593_s2 = inlined_call_operand.hbm [shape: f32[1,128], index: 2, kind: output, shape index: {}]  }
   0x1   :  { %v511_v0 = vld [vmem:[%s592_s1 + $0x58] sm:$0xff]  ;;  %450 = vset.pattern.permute.xlu1 %v485_v1  ;;  %449 = vset.pattern.permute.xlu0 %v486_v2 }
   0x2   :  { %7 = vsyncpa [#allocation3], 0  ;;  %58 = vperm.xlu1 %450, %v511_v0   ;;  %34 = vperm.xlu0 %449, %v511_v0   ;;  %v518_v3 = vld [vmem:[%s592_s1 + $0x50] sm:$0xff]  ;;  %v487_v4 = vmov 1   ;;  %v525_v5 = vld [vmem:[%s592_s1 + $0x48] sm:$0xff]  ;;  %vm117_vm0 = vcmask 261120   ;;  %v37_v9 = vlaneseq }
   0x3   :  { %v532_v6 = vld [vmem:[%s592_s1 + $0x40] sm:$0xff]  ;;  %v488_v8 = vmov 3   ;;  %v98_v48 = vld [vmem:[%s592_s1 + $0x8] sm:$0xff]  ;;  %v99_v49 = vld [vmem:[%s592_s1 + $0x10] sm:$0xff]  ;;  %v489_v52 = vmov 4   ;;  %v490_v53 = vmov 5  }
   0x4   :  { %v97_v7 = vld [vmem:[%s592_s1] sm:$0xff]  ;;  %v38_v10 = vshrl.u32 %v37_v9, 7  ;;  %v100_v50 = vld [vmem:[%s592_s1 + $0x18] sm:$0xff]  ;;  %v491_v54 = vmov 6  }
   0x5   :  { %421 = vmatprep.mubr.msk.f32.mxu0 %vm117_vm0, %v97_v7  ;;  %v12_v12 = vld [vmem:[%s591_s0] sm:$0x3]  ;;  %v222_v9 = vld [vmem:[%s592_s1 + $0x38] sm:$0xff] }
   0x6   :  { %451 = vset.pattern.permute.xlu1 %v487_v4  ;;  %29 = vperm.xlu0 %449, %v518_v3   ;;  %v39_v11 = vsub.s32 0, %v38_v10  ;;  %v83_v14 = vsub.s32 1, %v38_v10  ;;  %v219_v51 = vld [vmem:[%s592_s1 + $0x20] sm:$0xff] }
   0x7   :  { %78 = vperm.xlu1 %451, %v511_v0   ;;  %435 = vmatprep.mubr.msk.f32.mxu1 %vm117_vm0, %v219_v51 }
   0x8   :  { %v40_v13 = vrot.slane %v12_v12, %v39_v11  ;;  %v84_v18 = vrot.slane %v12_v12, %v83_v14 }
   0xa   :  { %24 = vperm.xlu0 %449, %v525_v5  }
   0xb   :  { %452 = vset.pattern.permute.xlu1 %v485_v1 }
   0xc   :  { %54 = vperm.xlu1 %452, %v518_v3  }
   0xe   :  { %453 = vset.pattern.permute.xlu0 %v487_v4 }
   0xf   :  { %74 = vperm.xlu0 %453, %v518_v3  }
  0x10   :  { %454 = vset.pattern.permute.xlu1 %v486_v2 }
  0x11   :  { %19 = vperm.xlu1 %454, %v532_v6  }
  0x13   :  { %70 = vperm.xlu0 %453, %v525_v5  }
  0x15   :  { %455 = vset.pattern.permute.xlu1 %v485_v1 }
  0x16   :  { %50 = vperm.xlu1 %455, %v525_v5  }
  0x17   :  { %66 = vperm.xlu0 %453, %v532_v6  }
  0x1a   :  { %46 = vperm.xlu1 %455, %v532_v6  }
  0x1b   :  { %457 = vset.pattern.permute.xlu0 %v488_v8 }
  0x1c   :  { %110 = vperm.xlu0 %457, %v518_v3  }
  0x1e   :  { %456 = vset.pattern.permute.xlu1 %v488_v8  ;;  %v221_v8 = vld [vmem:[%s592_s1 + $0x30] sm:$0xff] }
  0x1f   :  { %114 = vperm.xlu1 %456, %v511_v0  }
  0x20   :  { %458 = vset.pattern.permute.xlu0 %v489_v52 }
  0x21   :  { %224 = vperm.xlu0 %458, %v532_v6  }
  0x23   :  { %106 = vperm.xlu1 %456, %v525_v5  }
  0x25   :  { %236 = vperm.xlu0 %458, %v511_v0  }
  0x27   :  { %102 = vperm.xlu1 %456, %v532_v6  }
  0x29   :  { %461 = vset.pattern.permute.xlu0 %v490_v53 }
  0x2a   :  { %345 = vperm.xlu0 %461, %v525_v5  }
  0x2b   :  { %459 = vset.pattern.permute.xlu1 %v489_v52 }
  0x2c   :  { %228 = vperm.xlu1 %459, %v525_v5  }
  0x2e   :  { %462 = vset.pattern.permute.xlu0 %v491_v54 }
  0x2f   :  { %370 = vperm.xlu0 %462, %v532_v6  }
  0x30   :  { %232 = vperm.xlu1 %459, %v518_v3  }
  0x34   :  { %460 = vset.pattern.permute.xlu1 %v490_v53 }
  0x35   :  { %341 = vperm.xlu1 %460, %v532_v6   ;;  %v220_v6 = vld [vmem:[%s592_s1 + $0x28] sm:$0xff]  ;;  %s492_s1 = smov [#allocation2]  }
  0x36   :  { %s381_s6 = sshll.u32 %s492_s1, 4  ;;  %s382_s6 = int_to_ptr.vmem [resolvable:$true] %s381_s6 }
  0x37   :  { %s463_s7 = scalar_lea.vmem %s382_s6, 16  ;;  %s467_s8 = scalar_lea.vmem %s382_s6, 32 }
  0x38   :  { %p464_p0 = scmp.ne.s32.totalorder %s382_s6, %s463_s7  ;;  %p468_p1 = scmp.lt.s32.totalorder %s382_s6, %s382_s6 }
  0x39   :  { %349 = vperm.xlu1 %460, %v518_v3   ;;  %p469_p2 = scmp.lt.s32.totalorder %s467_s8, %s463_s7 }
  0x3b   :  { %p470_p3 = por %p469_p2, %p468_p1 }
  0x3d   :  { %353 = vperm.xlu1 %460, %v511_v0   ;;  %p471_p4 = pnand %p470_p3, %p464_p0 }
  0x7d   :  { %v59_v15 = vpop.permute.xlu1 %58  ;;  %v35_v16 = vpop.permute.xlu0 %34 }
  0x7e   :  { %v44_v17 = vmul.f32 %v40_v13, %v35_v16 }
  0x80   :  { %v64_v21 = vadd.f32 %v59_v15, %v44_v17 }
  0x81   :  { %v30_v19 = vpop.permute.xlu0 %29 }
  0x82   :  { %v79_v20 = vpop.permute.xlu1 %78  ;;  %v43_v27 = vmul.f32 %v40_v13, %v30_v19 }
  0x83   :  { %v88_v22 = vmul.f32 %v84_v18, %v79_v20 }
  0x85   :  { %v25_v23 = vpop.permute.xlu0 %24  ;;  %v92_v24 = vadd.f32 %v88_v22, %v64_v21 }
  0x86   :  { %v42_v35 = vmul.f32 %v40_v13, %v25_v23 }
  0x87   :  { %v55_v25 = vpop.permute.xlu1 %54  ;;  %v96_v26 = vmax.f32 %v92_v24, 0.0 }
  0x88   :  { %v63_v29 = vadd.f32 %v55_v25, %v43_v27 }
  0x89   :  { %413 = vmatprep.subr.mxu0 %v96_v26 }
  0x8a   :  { %v75_v28 = vpop.permute.xlu0 %74  ;;  %414 = vmatpush3.msra.mxu0 %v96_v26 }
  0x8b   :  { %v87_v30 = vmul.f32 %v84_v18, %v75_v28 }
  0x8c   :  { %v20_v31 = vpop.permute.xlu1 %19 }
  0x8d   :  { %v91_v32 = vadd.f32 %v87_v30, %v63_v29  ;;  %v41_v40 = vmul.f32 %v40_v13, %v20_v31 }
  0x8e   :  { %v71_v33 = vpop.permute.xlu0 %70 }
  0x8f   :  { %v95_v34 = vmax.f32 %v91_v32, 0.0  ;;  %v86_v37 = vmul.f32 %v84_v18, %v71_v33 }
  0x91   :  { %v51_v36 = vpop.permute.xlu1 %50  ;;  %415 = vmatprep.subr.mxu0 %v95_v34 }
  0x92   :  { %v62_v38 = vadd.f32 %v51_v36, %v42_v35  ;;  %416 = vmatpush3.msra.mxu0 %v95_v34  ;;  %v67_v39 = vpop.permute.xlu0 %66 }
  0x93   :  { %v85_v44 = vmul.f32 %v84_v18, %v67_v39 }
  0x94   :  { %v90_v41 = vadd.f32 %v86_v37, %v62_v38 }
  0x95   :  { %v47_v42 = vpop.permute.xlu1 %46 }
  0x96   :  { %v94_v43 = vmax.f32 %v90_v41, 0.0  ;;  %v61_v45 = vadd.f32 %v47_v42, %v41_v40 }
  0x97   :  { %v111_v60 = vpop.permute.xlu0 %110 }
  0x98   :  { %v89_v46 = vadd.f32 %v85_v44, %v61_v45  ;;  %417 = vmatprep.subr.mxu0 %v94_v43 }
  0x99   :  { %418 = vmatpush3.msra.mxu0 %v94_v43 }
  0x9a   :  { %v93_v47 = vmax.f32 %v89_v46, 0.0  ;;  %v115_v55 = vpop.permute.xlu1 %114 }
  0x9c   :  { %419 = vmatprep.subr.mxu0 %v93_v47  ;;  %v225_v12 = vpop.permute.xlu0 %224 }
  0x9d   :  { %420 = vmatpush3.msra.mxu0 %v93_v47 }
  0x9e   :  { %422 = vmatmul.mubr.msk.f32.vlgmr.msra.gmra.mxu0 %vm117_vm0, %v98_v48  ;;  %v107_v56 = vpop.permute.xlu1 %106 }
  0x9f   :  { %424 = vmatprep.mubr.msk.f32.mxu0 %vm117_vm0, %v99_v49 }
  0xa0   :  { %v237_v14 = vpop.permute.xlu0 %236 }
  0xa2   :  { %425 = vmatmul.mubr.msk.f32.gmra.mxu0 %vm117_vm0, %v100_v50  ;;  %v103_v62 = vpop.permute.xlu1 %102 }
  0xa5   :  { %v346_v24 = vpop.permute.xlu0 %345 }
  0xa7   :  { %v229_v10 = vpop.permute.xlu1 %228 }
  0xaa   :  { %v371_v42 = vpop.permute.xlu0 %370 }
  0xab   :  { %v233_v11 = vpop.permute.xlu1 %232 }
  0xb0   :  { %v342_v13 = vpop.permute.xlu1 %341 }
  0xb4   :  { %v350_v20 = vpop.permute.xlu1 %349 }
  0xb8   :  { %v354_v33 = vpop.permute.xlu1 %353 }
 0x15e   :  { %v423_v57 = vpop.f32.mrf.mxu0 }
 0x15f   :  { %v202_v1 = vadd.f32 %v423_v57, %v107_v56 }
 0x160   :  { %v196_v58 = vpop.f32.mrf.mxu0 }
 0x161   :  { %v197_v5 = vadd.f32 %v196_v58, %v103_v62  ;;  %v216_v7 = vmax.f32 %v202_v1, 0.0 }
 0x162   :  { %v426_v59 = vpop.f32.mrf.mxu0 }
 0x163   :  { %v212_v61 = vadd.f32 %v426_v59, %v115_v55  ;;  %v215_v0 = vmax.f32 %v197_v5, 0.0 }
 0x164   :  { %v206_v63 = vpop.f32.mrf.mxu0 }
 0x165   :  { %v218_v2 = vmax.f32 %v212_v61, 0.0  ;;  %v207_v4 = vadd.f32 %v206_v63, %v111_v60 }
 0x167   :  { %v217_v3 = vmax.f32 %v207_v4, 0.0  ;;  %427 = vmatprep.subr.mxu1 %v218_v2 }
 0x168   :  { %428 = vmatpush3.msra.mxu1 %v218_v2 }
 0x169   :  { %429 = vmatprep.subr.mxu1 %v217_v3 }
 0x16a   :  { %430 = vmatpush3.msra.mxu1 %v217_v3 }
 0x16b   :  { %431 = vmatprep.subr.mxu1 %v216_v7 }
 0x16c   :  { %432 = vmatpush3.msra.mxu1 %v216_v7 }
 0x16d   :  { %433 = vmatprep.subr.mxu1 %v215_v0 }
 0x16e   :  { %434 = vmatpush3.msra.mxu1 %v215_v0 }
 0x16f   :  { %436 = vmatmul.mubr.msk.f32.vlgmr.msra.gmra.mxu1 %vm117_vm0, %v220_v6 }
 0x170   :  { %438 = vmatprep.mubr.msk.f32.mxu1 %vm117_vm0, %v221_v8 }
 0x173   :  { %439 = vmatmul.mubr.msk.f32.gmra.mxu1 %vm117_vm0, %v222_v9 }
 0x22f   :  { %v437_v15 = vpop.f32.mrf.mxu1 }
 0x230   :  { %v323_v16 = vadd.f32 %v437_v15, %v229_v10 }
 0x231   :  { %v317_v17 = vpop.f32.mrf.mxu1 }
 0x232   :  { %v318_v18 = vadd.f32 %v317_v17, %v225_v12  ;;  %v337_v21 = vmax.f32 %v323_v16, 0.0 }
 0x233   :  { %v440_v19 = vpop.f32.mrf.mxu1 }
 0x234   :  { %v336_v22 = vmax.f32 %v318_v18, 0.0  ;;  %v333_v23 = vadd.f32 %v440_v19, %v237_v14  ;;  %v357_v28 = vmul.f32 %v346_v24, %v337_v21 }
 0x235   :  { %v327_v25 = vpop.f32.mrf.mxu1 }
 0x236   :  { %v356_v26 = vmul.f32 %v342_v13, %v336_v22  ;;  %v328_v27 = vadd.f32 %v327_v25, %v233_v11  ;;  %v339_v29 = vmax.f32 %v333_v23, 0.0 }
 0x238   :  { %v338_v30 = vmax.f32 %v328_v27, 0.0  ;;  %v360_v31 = vadd.f32 %v357_v28, %v356_v26  ;;  %v359_v34 = vmul.f32 %v354_v33, %v339_v29 }
 0x23a   :  { %v358_v32 = vmul.f32 %v350_v20, %v338_v30 }
 0x23c   :  { %v361_v35 = vadd.f32 %v360_v31, %v358_v32 }
 0x23e   :  { %v362_v36 = vadd.f32 %v361_v35, %v359_v34 }
 0x240   :  { %v363_v37 = vrot.slane %v362_v36, 4 }
 0x242   :  { %v364_v38 = vadd.f32 %v363_v37, %v362_v36 }
 0x244   :  { %v365_v39 = vrot.slane %v364_v38, 2 }
 0x246   :  { %v366_v40 = vadd.f32 %v365_v39, %v364_v38 }
 0x248   :  { %v367_v41 = vrot.slane %v366_v40, 1 }
 0x24a   :  { %v368_v43 = vadd.f32 %v367_v41, %v366_v40 }
 0x24c   :  { %v373_v44 = vadd.f32 %v371_v42, %v368_v43 }
 0x24e   :  { %374 = vst [vmem:[#allocation2] sm:$0x1] %v373_v44 }
 0x24f   :  { %474 = shalt.err (!%p471_p4)
}
 0x250   :  { %384 = dma.vmem_to_hbm [thread:$0]  %s382_s6, 16, %s593_s2, [#allocation3]  }
 0x251   :  { %483 = dma.done.wait [#allocation3], 16  }
 0x252   :  { %484 = vsyncadd [#allocation3], 4294967280 }
 0x253   :  { %388 = vsyncpa [#allocation3], 1 }

</bundles_post_ra>
